<compile_context>
chip_gen: v5e
topology: v5e:2x2
jax: 0.10.0
libtpu: 0.0.40
codegen_flags: <defaults>
</compile_context>

<pallas_src>
import functools

import jax
import jax.numpy as jnp
from jax.experimental import pallas as pl
from jax.experimental.pallas import tpu as pltpu


def _round_up(x, m):
    return ((x + m - 1) // m) * m


def _patch_embed_kernel(x_ref, w_ref, b_ref, o_ref):
    # x_ref: [tm, K] (compute dtype)   w_ref: [K, tn] (compute dtype)
    # b_ref: [1, tn] float32           o_ref: [tm, tn] (output dtype)
    acc = jnp.dot(x_ref[...], w_ref[...], preferred_element_type=jnp.float32)
    o_ref[...] = (acc + b_ref[...]).astype(o_ref.dtype)


@functools.partial(
    jax.jit, static_argnames=("patch_size", "tm", "tn_max", "compute_dtype")
)
def patch_embedding_3d(
    x, weight, bias, *, patch_size, tm=512, tn_max=256, compute_dtype=jnp.bfloat16
):
    """
    x:      [B, C, D, H, W]  (NCDHW, like PyTorch)
    weight: [E, C, p, p, p]  (PyTorch Conv3d weight layout)
    bias:   [E]
    returns [B, N, E] with N = (D//p)*(H//p)*(W//p)
    """
    p = patch_size
    B, C, D, H, W = x.shape
    E = weight.shape[0]
    Dp, Hp, Wp = D // p, H // p, W // p
    N = Dp * Hp * Wp
    K = C * p * p * p
    M = B * N
    out_dtype = x.dtype

    # ---- Glue (XLA): im2col patch rearrange, performed in the narrow compute
    # dtype so the unavoidable HBM pass moves half the bytes.
    # TODO(synk): the 8-D patch gather is not expressible as a rectangular
    # BlockSpec; it stays in XLA (bf16 + allow_input_fusion) rather than being
    # faked with tiny strided in-kernel DMAs.
    xq = x.astype(compute_dtype)
    xp = xq.reshape(B, C, Dp, p, Hp, p, Wp, p)
    xp = jnp.transpose(xp, (0, 2, 4, 6, 1, 3, 5, 7))   # [B, Dp, Hp, Wp, C, p, p, p]
    patches = xp.reshape(M, K)                          # [M, K]

    w_t = weight.reshape(E, K).T.astype(compute_dtype)  # [K, E]
    b2d = bias.astype(jnp.float32).reshape(1, E)        # [1, E]

    # ---- Pad M and E to performance-friendly tile multiples.
    tm_eff = min(tm, _round_up(M, 8))      # multiple of 8, at most the requested tm
    M_pad = _round_up(M, tm_eff)
    E_pad = _round_up(E, 128)              # lane-dense (unmasked) output stores
    tn = 128
    for cand in (512, 256, 128):
        if cand <= tn_max and E_pad % cand == 0:
            tn = cand
            break

    if M_pad != M:
        patches = jnp.pad(patches, ((0, M_pad - M), (0, 0)))
    if E_pad != E:
        w_t = jnp.pad(w_t, ((0, 0), (0, E_pad - E)))
        b2d = jnp.pad(b2d, ((0, 0), (0, E_pad - E)))

    grid = (M_pad // tm_eff, E_pad // tn)   # M outer (patch tile stays resident), E inner

    # ---- Explicit VMEM budget: double-buffered in/weight/bias tiles + output tiles.
    in_bytes = jnp.dtype(compute_dtype).itemsize
    out_bytes = jnp.dtype(out_dtype).itemsize
    vmem_needed = (
        2 * (tm_eff * K * in_bytes + K * tn * in_bytes + tn * 4)
        + 2 * (tm_eff * tn * out_bytes)
    )
    vmem_limit = int(
        min(64 * 1024 * 1024, max(int(vmem_needed * 1.5), 8 * 1024 * 1024))
    )

    cost = pl.CostEstimate(
        flops=2 * M_pad * K * E_pad,
        transcendentals=0,
        bytes_accessed=(
            M_pad * K * in_bytes + K * E_pad * in_bytes + M_pad * E_pad * out_bytes
        ),
    )

    out = pl.pallas_call(
        _patch_embed_kernel,
        out_shape=jax.ShapeDtypeStruct((M_pad, E_pad), out_dtype),
        grid_spec=pltpu.PrefetchScalarGridSpec(
            num_scalar_prefetch=0,
            grid=grid,
            in_specs=[
                pl.BlockSpec((tm_eff, K), lambda i, j: (i, 0)),  # patch tile
                pl.BlockSpec((K, tn), lambda i, j: (0, j)),      # weight tile
                pl.BlockSpec((1, tn), lambda i, j: (0, j)),      # bias tile
            ],
            out_specs=pl.BlockSpec((tm_eff, tn), lambda i, j: (i, j)),
        ),
        compiler_params=pltpu.CompilerParams(
            dimension_semantics=("parallel", "parallel"),
            vmem_limit_bytes=vmem_limit,
            allow_input_fusion=(True, True, True),
        ),
        cost_estimate=cost,
    )(patches, w_t, b2d)

    return out[:M, :E].reshape(B, N, E)


if __name__ == "__main__":
    # Small shapes consistent with the module's forward.
    B, C, D, H, W = 2, 4, 16, 16, 16
    patch_size = 4
    embed_dim = 32

    key = jax.random.PRNGKey(0)
    kx, kw, kb = jax.random.split(key, 3)

    x = jax.random.normal(kx, (B, C, D, H, W), dtype=jnp.float32)
    # Deterministic synthetic Conv3d parameters: [E, C, p, p, p] and [E].
    weight = (
        jax.random.normal(
            kw, (embed_dim, C, patch_size, patch_size, patch_size), dtype=jnp.float32
        )
        * 0.02
    )
    bias = jax.random.normal(kb, (embed_dim,), dtype=jnp.float32) * 0.02

    y = patch_embedding_3d(x, weight, bias, patch_size=patch_size)
    y = jax.block_until_ready(y)

    p = patch_size
    Dp, Hp, Wp = D // p, H // p, W // p
    N = Dp * Hp * Wp
    K = C * p ** 3

    # Reference 1: mirrors the kernel numerics exactly (bf16-quantized operands,
    # f32 accumulation, f32 bias add) -> tight tolerance.
    xq = x.astype(jnp.bfloat16).astype(jnp.float32)
    wq = weight.astype(jnp.bfloat16).astype(jnp.float32)
    xpq = xq.reshape(B, C, Dp, p, Hp, p, Wp, p)
    xpq = jnp.transpose(xpq, (0, 2, 4, 6, 1, 3, 5, 7)).reshape(B, N, K)
    ref_bf16 = (
        jax.lax.dot_general(
            xpq,
            wq.reshape(embed_dim, K),
            dimension_numbers=(((2,), (1,)), ((), ())),
            precision=jax.lax.Precision.HIGHEST,
            preferred_element_type=jnp.float32,
        )
        + bias[None, None, :]
    )

    # Reference 2: pure f32 math (module semantics) -> loose tolerance that
    # covers the bf16 operand quantization.
    xp32 = x.reshape(B, C, Dp, p, Hp, p, Wp, p)
    xp32 = jnp.transpose(xp32, (0, 2, 4, 6, 1, 3, 5, 7)).reshape(B, N, K)
    ref_f32 = (
        jax.lax.dot_general(
            xp32,
            weight.reshape(embed_dim, K),
            dimension_numbers=(((2,), (1,)), ((), ())),
            precision=jax.lax.Precision.HIGHEST,
            preferred_element_type=jnp.float32,
        )
        + bias[None, None, :]
    )

    assert y.shape == (B, N, embed_dim)
    assert y.dtype == x.dtype
    assert jnp.allclose(y, ref_bf16, atol=2e-4, rtol=2e-4)
    assert jnp.allclose(y, ref_f32, atol=5e-2, rtol=5e-2)

    print("KERNEL_OK")
</pallas_src>

<mosaic_0001>
module attributes {stable_mosaic.version = 11 : i64} {
  func.func @_patch_embed_kernel(%arg0: i32, %arg1: i32, %arg2: memref<128x256xbf16, #tpu.memory_space<vmem>>, %arg3: memref<256x128xbf16, #tpu.memory_space<vmem>>, %arg4: memref<1x128xf32, #tpu.memory_space<vmem>>, %arg5: memref<128x128xf32, #tpu.memory_space<vmem>>) attributes {dimension_semantics = [#tpu.dimension_semantics<parallel>, #tpu.dimension_semantics<parallel>], iteration_bounds = array<i64: 1, 1>, scalar_prefetch = 0 : i64, scratch_operands = 0 : i64, tpu.core_type = #tpu.core_type<tc>, window_params = [{transform_indices = @transform_0, window_bounds = array<i64: 128, 256>}, {transform_indices = @transform_1, window_bounds = array<i64: 256, 128>}, {transform_indices = @transform_2, window_bounds = array<i64: 1, 128>}, {transform_indices = @transform_3, window_bounds = array<i64: 128, 128>}]} {
    %c0 = arith.constant 0 : index
    %c0_0 = arith.constant 0 : index
    %0 = vector.load %arg2[%c0, %c0_0] : memref<128x256xbf16, #tpu.memory_space<vmem>>, vector<128x256xbf16>
    %c0_1 = arith.constant 0 : index
    %c0_2 = arith.constant 0 : index
    %1 = vector.load %arg3[%c0_1, %c0_2] : memref<256x128xbf16, #tpu.memory_space<vmem>>, vector<256x128xbf16>
    %cst = arith.constant dense<0.000000e+00> : vector<128x128xf32>
    %2 = tpu.matmul %0, %1, %cst {dimension_numbers = #tpu.dot_dimension_numbers<[1], [0], [0], [1], [0, 0, 1, 1], [], []>} : vector<128x256xbf16>, vector<256x128xbf16>, vector<128x128xf32> -> vector<128x128xf32>
    %c0_3 = arith.constant 0 : index
    %c0_4 = arith.constant 0 : index
    %3 = vector.load %arg4[%c0_3, %c0_4] : memref<1x128xf32, #tpu.memory_space<vmem>>, vector<1x128xf32>
    %4 = vector.broadcast %3 : vector<1x128xf32> to vector<128x128xf32>
    %5 = arith.addf %2, %4 : vector<128x128xf32>
    %c0_5 = arith.constant 0 : index
    %c0_6 = arith.constant 0 : index
    %6 = vector.load %arg5[%c0_5, %c0_6] : memref<128x128xf32, #tpu.memory_space<vmem>>, vector<128x128xf32>
    tpu.vector_store %arg5[%c0_5, %c0_6], %5 {strides = array<i32>} : memref<128x128xf32, #tpu.memory_space<vmem>>, vector<128x128xf32>,
    return
  }
  func.func @transform_0(%arg0: i32, %arg1: i32) -> (i32, i32) {
    %c0_i32 = arith.constant 0 : i32
    %c0_i32_0 = arith.constant 0 : i32
    return %arg0, %c0_i32 : i32, i32
  }
  func.func @transform_1(%arg0: i32, %arg1: i32) -> (i32, i32) {
    %c0_i32 = arith.constant 0 : i32
    %c0_i32_0 = arith.constant 0 : i32
    return %c0_i32, %arg1 : i32, i32
  }
  func.func @transform_2(%arg0: i32, %arg1: i32) -> (i32, i32) {
    %c0_i32 = arith.constant 0 : i32
    %c0_i32_0 = arith.constant 0 : i32
    return %c0_i32, %arg1 : i32, i32
  }
  func.func @transform_3(%arg0: i32, %arg1: i32) -> (i32, i32) {
    %c0_i32 = arith.constant 0 : i32
    return %arg0, %arg1 : i32, i32
  }
}

</mosaic_0001>

<bundles_post_ra>
// kernel: patch_embedding_3d.2
= control target key start
LH: loop header
LB: loop body
LE: loop exit
PB: predicated region body
PF: predicated region fallthrough
CT: control target
= control target key end

     0   :  { %s1686_s0 = inlined_call_operand.vmem [shape: bf16[128,256], index: 0, kind: input, shape index: {}]   ;;  %s1687_s1 = inlined_call_operand.vmem [shape: bf16[256,32], index: 1, kind: input, shape index: {}]   ;;  %s1688_s2 = inlined_call_operand.<no memory space> [shape: bf16[], index: 2, kind: input, shape index: {}]   ;;  %s1689_s3 = inlined_call_operand.vmem [shape: f32[1,32], index: 3, kind: input, shape index: {}]   ;;  %s1690_s4 = inlined_call_operand.<no memory space> [shape: f32[], index: 4, kind: input, shape index: {}]   ;;  %s1691_s5 = inlined_call_operand.vmem [shape: f32[128,128], index: 5, kind: output, shape index: {}]  }
   0x1   :  { %v10_v0 = vstv %s1688_s2  ;;  %v15_v1 = vstv %s1690_s4 }
   0x2   :  { %v1360_v2 = vunpack.i.l.bf16 %v10_v0 }
   0x3   :  { %v34_v3 = vlaneseq  ;;  %v1129_v4 = vld [vmem:[%s1687_s1 + $0x38] sm:$0xff]   ;;  %v1127_v6 = vld [vmem:[%s1687_s1 + $0x30] sm:$0xff]   ;;  %v1125_v12 = vld [vmem:[%s1687_s1 + $0x28] sm:$0xff]  }
   0x4   :  { %v1145_v5 = vld [vmem:[%s1687_s1 + $0x78] sm:$0xff]   ;;  %v353_v7 = vunpack.c.l.bf16 %v1129_v4  ;;  %v376_v8 = vunpack.c.h.bf16 %v1129_v4  ;;  %v1143_v11 = vld [vmem:[%s1687_s1 + $0x70] sm:$0xff]   ;;  %v307_v14 = vunpack.c.l.bf16 %v1127_v6  ;;  %v330_v15 = vunpack.c.h.bf16 %v1127_v6  ;;  %v1141_v17 = vld [vmem:[%s1687_s1 + $0x68] sm:$0xff]  }
   0x5   :  { %v721_v9 = vunpack.c.l.bf16 %v1145_v5  ;;  %v744_v10 = vunpack.c.h.bf16 %v1145_v5  ;;  %v1378_v13 = vand.u32 127, %v34_v3  ;;  %v675_v16 = vunpack.c.l.bf16 %v1143_v11  ;;  %v1123_v29 = vld [vmem:[%s1687_s1 + $0x20] sm:$0xff]   ;;  %v1121_v44 = vld [vmem:[%s1687_s1 + $0x18] sm:$0xff]   ;;  %v1119_v58 = vld [vmem:[%s1687_s1 + $0x10] sm:$0xff]  }
   0x6   :  { %v698_v18 = vunpack.c.h.bf16 %v1143_v11  ;;  %v261_v19 = vunpack.c.l.bf16 %v1125_v12  ;;  %v284_v20 = vunpack.c.h.bf16 %v1125_v12  ;;  %v629_v28 = vunpack.c.l.bf16 %v1141_v17  ;;  %v1139_v37 = vld [vmem:[%s1687_s1 + $0x60] sm:$0xff]   ;;  %v1137_v51 = vld [vmem:[%s1687_s1 + $0x58] sm:$0xff]   ;;  %v1135_v5 = vld [vmem:[%s1687_s1 + $0x50] sm:$0xff]  }
   0x7   :  { %vm37_vm0 = vcmp.lt.s32.totalorder %v1378_v13, 32  ;;  %v652_v36 = vunpack.c.h.bf16 %v1141_v17  ;;  %v215_v40 = vunpack.c.l.bf16 %v1123_v29  ;;  %v238_v43 = vunpack.c.h.bf16 %v1123_v29  ;;  %v1167_v13 = vld [vmem:[%s1686_s0 + $0x28] sm:$0xf0] }
   0x8   :  { %v359_v21 = vsel %vm37_vm0, %v353_v7, %v1360_v2  ;;  %v382_v22 = vsel %vm37_vm0, %v376_v8, %v1360_v2  ;;  %v727_v23 = vsel %vm37_vm0, %v721_v9, %v1360_v2  ;;  %v750_v24 = vsel %vm37_vm0, %v744_v10, %v1360_v2 }
   0x9   :  { %v361_v25 = vpack.c.bf16 0.0, %v359_v21  ;;  %v384_v26 = vpack.c.bf16 0.0, %v382_v22  ;;  %v729_v27 = vpack.c.bf16 0.0, %v727_v23  ;;  %v752_v30 = vpack.c.bf16 0.0, %v750_v24  ;;  %v1133_v22 = vld [vmem:[%s1687_s1 + $0x48] sm:$0xff]  }
   0xa   :  { %v313_v31 = vsel %vm37_vm0, %v307_v14, %v1360_v2  ;;  %v336_v32 = vsel %vm37_vm0, %v330_v15, %v1360_v2  ;;  %v681_v33 = vsel %vm37_vm0, %v675_v16, %v1360_v2  ;;  %v704_v35 = vsel %vm37_vm0, %v698_v18, %v1360_v2  ;;  %v1117_v14 = vld [vmem:[%s1687_s1 + $0x8] sm:$0xff]  }
   0xb   :  { %364 = vst [vmem:[#allocation12 + $0x38] sm:$0xf] %v361_v25  ;;  %v315_v34 = vpack.c.bf16 0.0, %v313_v31  ;;  %v338_v38 = vpack.c.bf16 0.0, %v336_v32  ;;  %v267_v39 = vsel %vm37_vm0, %v261_v19, %v1360_v2  ;;  %v683_v41 = vpack.c.bf16 0.0, %v681_v33 }
   0xc   :  { %387 = vst [vmem:[#allocation12 + $0x3c] sm:$0xf] %v384_v26  ;;  %v290_v42 = vsel %vm37_vm0, %v284_v20, %v1360_v2  ;;  %v706_v45 = vpack.c.bf16 0.0, %v704_v35  ;;  %v635_v46 = vsel %vm37_vm0, %v629_v28, %v1360_v2  ;;  %v583_v47 = vunpack.c.l.bf16 %v1139_v37 }
   0xd   :  { %732 = vst [vmem:[#allocation12 + $0x78] sm:$0xf] %v729_v27  ;;  %v269_v48 = vpack.c.bf16 0.0, %v267_v39  ;;  %v658_v49 = vsel %vm37_vm0, %v652_v36, %v1360_v2  ;;  %v606_v50 = vunpack.c.h.bf16 %v1139_v37  ;;  %v292_v52 = vpack.c.bf16 0.0, %v290_v42 }
   0xe   :  { %755 = vst [vmem:[#allocation12 + $0x7c] sm:$0xf] %v752_v30  ;;  %v221_v53 = vsel %vm37_vm0, %v215_v40, %v1360_v2  ;;  %v169_v54 = vunpack.c.l.bf16 %v1121_v44  ;;  %v637_v55 = vpack.c.bf16 0.0, %v635_v46  ;;  %v244_v56 = vsel %vm37_vm0, %v238_v43, %v1360_v2  ;;  %v31_v30 = vld [vmem:[%s1687_s1] sm:$0xff]  }
   0xf   :  { %318 = vst [vmem:[#allocation12 + $0x30] sm:$0xf] %v315_v34  ;;  %v192_v57 = vunpack.c.h.bf16 %v1121_v44  ;;  %v660_v59 = vpack.c.bf16 0.0, %v658_v49  ;;  %v589_v60 = vsel %vm37_vm0, %v583_v47, %v1360_v2  ;;  %v537_v61 = vunpack.c.l.bf16 %v1137_v51 }
  0x10   :  { %341 = vst [vmem:[#allocation12 + $0x34] sm:$0xf] %v338_v38  ;;  %v223_v63 = vpack.c.bf16 0.0, %v221_v53  ;;  %v612_v0 = vsel %vm37_vm0, %v606_v50, %v1360_v2  ;;  %v560_v4 = vunpack.c.h.bf16 %v1137_v51  ;;  %v246_v6 = vpack.c.bf16 0.0, %v244_v56  ;;  %v1131_v38 = vld [vmem:[%s1687_s1 + $0x40] sm:$0xff]  }
  0x11   :  { %686 = vst [vmem:[#allocation12 + $0x70] sm:$0xf] %v683_v41  ;;  %v175_v7 = vsel %vm37_vm0, %v169_v54, %v1360_v2  ;;  %v123_v8 = vunpack.c.l.bf16 %v1119_v58  ;;  %v591_v10 = vpack.c.bf16 0.0, %v589_v60  ;;  %v198_v11 = vsel %vm37_vm0, %v192_v57, %v1360_v2 }
  0x12   :  { %709 = vst [vmem:[#allocation12 + $0x74] sm:$0xf] %v706_v45  ;;  %v146_v12 = vunpack.c.h.bf16 %v1119_v58  ;;  %v614_v15 = vpack.c.bf16 0.0, %v612_v0  ;;  %v543_v16 = vsel %vm37_vm0, %v537_v61, %v1360_v2  ;;  %v491_v17 = vunpack.c.l.bf16 %v1135_v5 }
  0x13   :  { %v1298_v62 = vld [vmem:[#allocation12 + $0x38] sm:$0xff]  ;;  %272 = vst [vmem:[#allocation12 + $0x28] sm:$0xf] %v269_v48  ;;  %v177_v19 = vpack.c.bf16 0.0, %v175_v7  ;;  %v566_v20 = vsel %vm37_vm0, %v560_v4, %v1360_v2  ;;  %v514_v21 = vunpack.c.h.bf16 %v1135_v5  ;;  %v200_v23 = vpack.c.bf16 0.0, %v198_v11 }
  0x14   :  { %295 = vst [vmem:[#allocation12 + $0x2c] sm:$0xf] %v292_v52  ;;  %998 = vmatpush.bf16.msra.mxu0 %v1298_v62  ;;  %1307 = vmatpush.bf16.msra.mxu2 %v1298_v62  ;;  %v129_v24 = vsel %vm37_vm0, %v123_v8, %v1360_v2  ;;  %v77_v25 = vunpack.c.l.bf16 %v1117_v14  ;;  %v545_v27 = vpack.c.bf16 0.0, %v543_v16  ;;  %v152_v28 = vsel %vm37_vm0, %v146_v12, %v1360_v2  ;;  %v1149_v8 = vld [vmem:[%s1686_s0] sm:$0xf] }
  0x15   :  { %v1306_v9 = vld [vmem:[#allocation12 + $0x78] sm:$0xff]  ;;  %640 = vst [vmem:[#allocation12 + $0x68] sm:$0xf] %v637_v55  ;;  %v100_v29 = vunpack.c.h.bf16 %v1117_v14  ;;  %v568_v31 = vpack.c.bf16 0.0, %v566_v20  ;;  %v497_v32 = vsel %vm37_vm0, %v491_v17, %v1360_v2  ;;  %v445_v33 = vunpack.c.l.bf16 %v1133_v22  ;;  %v1181_v11 = vld [vmem:[%s1686_s0 + $0x40] sm:$0xf] }
  0x16   :  { %663 = vst [vmem:[#allocation12 + $0x6c] sm:$0xf] %v660_v59  ;;  %1047 = vmatpush.bf16.msra.mxu1 %v1306_v9  ;;  %1315 = vmatpush.bf16.msra.mxu3 %v1306_v9  ;;  %v131_v35 = vpack.c.bf16 0.0, %v129_v24  ;;  %v520_v36 = vsel %vm37_vm0, %v514_v21, %v1360_v2  ;;  %v468_v37 = vunpack.c.h.bf16 %v1133_v22  ;;  %v154_v39 = vpack.c.bf16 0.0, %v152_v28  ;;  %v1276_v9 = vld [vmem:[%s1686_s0 + $0x4] sm:$0xf0] }
  0x17   :  { %v1297_v18 = vld [vmem:[#allocation12 + $0x30] sm:$0xff]  ;;  %226 = vst [vmem:[#allocation12 + $0x20] sm:$0xf] %v223_v63  ;;  %v83_v40 = vsel %vm37_vm0, %v77_v25, %v1360_v2  ;;  %v32_v41 = vunpack.c.l.bf16 %v31_v30  ;;  %v499_v43 = vpack.c.bf16 0.0, %v497_v32  ;;  %v106_v44 = vsel %vm37_vm0, %v100_v29, %v1360_v2  ;;  %v1284_v12 = vld [vmem:[%s1686_s0 + $0x44] sm:$0xf0] }
  0x18   :  { %249 = vst [vmem:[#allocation12 + $0x24] sm:$0xf] %v246_v6  ;;  %999 = vmatpush.bf16.msra.mxu0 %v1297_v18  ;;  %1308 = vmatpush.bf16.msra.mxu2 %v1297_v18  ;;  %v54_v45 = vunpack.c.h.bf16 %v31_v30  ;;  %v522_v46 = vpack.c.bf16 0.0, %v520_v36  ;;  %v451_v47 = vsel %vm37_vm0, %v445_v33, %v1360_v2  ;;  %v399_v48 = vunpack.c.l.bf16 %v1131_v38  ;;  %v1275_v14 = vld [vmem:[%s1686_s0 + $0x4] sm:$0xf] }
  0x19   :  { %v1305_v26 = vld [vmem:[#allocation12 + $0x70] sm:$0xff]  ;;  %594 = vst [vmem:[#allocation12 + $0x60] sm:$0xf] %v591_v10  ;;  %v85_v50 = vpack.c.bf16 0.0, %v83_v40  ;;  %v474_v51 = vsel %vm37_vm0, %v468_v37, %v1360_v2  ;;  %v422_v52 = vunpack.c.h.bf16 %v1131_v38  ;;  %v108_v53 = vpack.c.bf16 0.0, %v106_v44 }
  0x1a   :  { %617 = vst [vmem:[#allocation12 + $0x64] sm:$0xf] %v614_v15  ;;  %1048 = vmatpush.bf16.msra.mxu1 %v1305_v26  ;;  %1316 = vmatpush.bf16.msra.mxu3 %v1305_v26  ;;  %v38_v54 = vsel %vm37_vm0, %v32_v41, %v1360_v2  ;;  %v453_v56 = vpack.c.bf16 0.0, %v451_v47  ;;  %v60_v57 = vsel %vm37_vm0, %v54_v45, %v1360_v2  ;;  %v476_v58 = vpack.c.bf16 0.0, %v474_v51  ;;  %v1151_v15 = vld [vmem:[%s1686_s0 + $0x8] sm:$0xf0] }
  0x1b   :  { %v1296_v34 = vld [vmem:[#allocation12 + $0x28] sm:$0xff]  ;;  %180 = vst [vmem:[#allocation12 + $0x18] sm:$0xf] %v177_v19  ;;  %v405_v59 = vsel %vm37_vm0, %v399_v48, %v1360_v2  ;;  %v39_v61 = vpack.c.bf16 0.0, %v38_v54  ;;  %v428_v62 = vsel %vm37_vm0, %v422_v52, %v1360_v2  ;;  %v62_v63 = vpack.c.bf16 0.0, %v60_v57 }
  0x1c   :  { %203 = vst [vmem:[#allocation12 + $0x1c] sm:$0xf] %v200_v23  ;;  %1000 = vmatpush.bf16.msra.mxu0 %v1296_v34  ;;  %1309 = vmatpush.bf16.msra.mxu2 %v1296_v34  ;;  %v407_v4 = vpack.c.bf16 0.0, %v405_v59  ;;  %v430_v5 = vpack.c.bf16 0.0, %v428_v62  ;;  %v1283_v17 = vld [vmem:[%s1686_s0 + $0x44] sm:$0xf]  ;;  %v1150_v19 = vor.u32 %v1276_v9, %v1149_v8  ;;  %v1182_v20 = vor.u32 %v1284_v12, %v1181_v11 }
  0x1d   :  { %v1304_v42 = vld [vmem:[#allocation12 + $0x68] sm:$0xff]  ;;  %548 = vst [vmem:[#allocation12 + $0x58] sm:$0xf] %v545_v27  ;;  %v1154_v22 = vor.u32 %v1275_v14, %v1151_v15  ;;  %v1157_v24 = vld [vmem:[%s1686_s0 + $0x10] sm:$0xf]  ;;  %v758_v37 = vshrl.u32 %v34_v3, 7 }
  0x1e   :  { %571 = vst [vmem:[#allocation12 + $0x5c] sm:$0xf] %v568_v31  ;;  %1049 = vmatpush.bf16.msra.mxu1 %v1304_v42  ;;  %1317 = vmatpush.bf16.msra.mxu3 %v1304_v42  ;;  %v1183_v18 = vld [vmem:[%s1686_s0 + $0x48] sm:$0xf0]  ;;  %v1278_v25 = vld [vmem:[%s1686_s0 + $0x14] sm:$0xf0] }
  0x1f   :  { %v1295_v49 = vld [vmem:[#allocation12 + $0x20] sm:$0xff]  ;;  %134 = vst [vmem:[#allocation12 + $0x10] sm:$0xf] %v131_v35  ;;  %v1186_v23 = vor.u32 %v1283_v17, %v1183_v18  ;;  %v1189_v26 = vld [vmem:[%s1686_s0 + $0x50] sm:$0xf]  ;;  %v1158_v32 = vor.u32 %v1278_v25, %v1157_v24  ;;  %vm760_vm1 = vcmp.lt.s32.totalorder %v758_v37, 1 }
  0x20   :  { %157 = vst [vmem:[#allocation12 + $0x14] sm:$0xf] %v154_v39  ;;  %1001 = vmatpush.bf16.msra.mxu0 %v1295_v49  ;;  %1310 = vmatpush.bf16.msra.mxu2 %v1295_v49  ;;  %v1286_v27 = vld [vmem:[%s1686_s0 + $0x54] sm:$0xf0]  ;;  %v1277_v28 = vld [vmem:[%s1686_s0 + $0x14] sm:$0xf] }
  0x21   :  { %v1303_v55 = vld [vmem:[#allocation12 + $0x60] sm:$0xff]  ;;  %502 = vst [vmem:[#allocation12 + $0x50] sm:$0xf] %v499_v43  ;;  %v1159_v29 = vld [vmem:[%s1686_s0 + $0x18] sm:$0xf0]  ;;  %v1190_v33 = vor.u32 %v1286_v27, %v1189_v26 }
  0x22   :  { %525 = vst [vmem:[#allocation12 + $0x54] sm:$0xf] %v522_v46  ;;  %1050 = vmatpush.bf16.msra.mxu1 %v1303_v55  ;;  %1318 = vmatpush.bf16.msra.mxu3 %v1303_v55  ;;  %v1285_v30 = vld [vmem:[%s1686_s0 + $0x54] sm:$0xf]  ;;  %v1191_v31 = vld [vmem:[%s1686_s0 + $0x58] sm:$0xf0]  ;;  %v1162_v34 = vor.u32 %v1277_v28, %v1159_v29 }
  0x23   :  { %v1294_v60 = vld [vmem:[#allocation12 + $0x18] sm:$0xff]  ;;  %88 = vst [vmem:[#allocation12 + $0x8] sm:$0xf] %v85_v50  ;;  %v1194_v35 = vor.u32 %v1285_v30, %v1191_v31  ;;  %v756_v36 = vld [vmem:[%s1689_s3] sm:$0x1] }
  0x24   :  { %111 = vst [vmem:[#allocation12 + $0xc] sm:$0xf] %v108_v53  ;;  %1002 = vmatpush.bf16.msra.mxu0 %v1294_v60  ;;  %1311 = vmatpush.bf16.msra.mxu2 %v1294_v60  ;;  %v761_v38 = vsel %vm760_vm1, %v756_v36, %v15_v1  ;;  %v1165_v40 = vld [vmem:[%s1686_s0 + $0x20] sm:$0xf]  ;;  %v1280_v3 = vld [vmem:[%s1686_s0 + $0x24] sm:$0xf0] }
  0x25   :  { %v1302_v0 = vld [vmem:[#allocation12 + $0x58] sm:$0xff]  ;;  %456 = vst [vmem:[#allocation12 + $0x48] sm:$0xf] %v453_v56  ;;  %v766_v39 = vsel %vm37_vm0, %v761_v38, %v15_v1  ;;  %v1197_v41 = vld [vmem:[%s1686_s0 + $0x60] sm:$0xf]  ;;  %v1166_v45 = vor.u32 %v1280_v3, %v1165_v40 }
  0x26   :  { %479 = vst [vmem:[#allocation12 + $0x4c] sm:$0xf] %v476_v58  ;;  %1051 = vmatpush.bf16.msra.mxu1 %v1302_v0  ;;  %1319 = vmatpush.bf16.msra.mxu3 %v1302_v0  ;;  %v1288_v42 = vld [vmem:[%s1686_s0 + $0x64] sm:$0xf0]  ;;  %v1279_v1 = vld [vmem:[%s1686_s0 + $0x24] sm:$0xf] }
  0x27   :  { %v1293_v6 = vld [vmem:[#allocation12 + $0x10] sm:$0xff]  ;;  %42 = vst [vmem:[#allocation12] sm:$0xf] %v39_v61  ;;  %v1287_v43 = vld [vmem:[%s1686_s0 + $0x64] sm:$0xf]  ;;  %v1198_v46 = vor.u32 %v1288_v42, %v1197_v41  ;;  %v1170_v47 = vor.u32 %v1279_v1, %v1167_v13 }
  0x28   :  { %65 = vst [vmem:[#allocation12 + $0x4] sm:$0xf] %v62_v63  ;;  %1003 = vmatpush.bf16.msra.mxu0 %v1293_v6  ;;  %1312 = vmatpush.bf16.msra.mxu2 %v1293_v6  ;;  %v1199_v44 = vld [vmem:[%s1686_s0 + $0x68] sm:$0xf0]  ;;  %v1173_v49 = vld [vmem:[%s1686_s0 + $0x30] sm:$0xf] }
  0x29   :  { %v1301_v7 = vld [vmem:[#allocation12 + $0x50] sm:$0xff]  ;;  %410 = vst [vmem:[#allocation12 + $0x40] sm:$0xf] %v407_v4  ;;  %v1202_v48 = vor.u32 %v1287_v43, %v1199_v44  ;;  %v1282_v50 = vld [vmem:[%s1686_s0 + $0x34] sm:$0xf0] }
  0x2a   :  { %433 = vst [vmem:[#allocation12 + $0x44] sm:$0xf] %v430_v5  ;;  %1052 = vmatpush.bf16.msra.mxu1 %v1301_v7  ;;  %1320 = vmatpush.bf16.msra.mxu3 %v1301_v7  ;;  %v1205_v51 = vld [vmem:[%s1686_s0 + $0x70] sm:$0xf]  ;;  %v1290_v52 = vld [vmem:[%s1686_s0 + $0x74] sm:$0xf0]  ;;  %v1174_v57 = vor.u32 %v1282_v50, %v1173_v49 }
  0x2b   :  { %v1292_v2 = vld [vmem:[#allocation12 + $0x8] sm:$0xff]  ;;  %769 = vst [vmem:[#allocation13] sm:$0x1] %v766_v39  ;;  %v1281_v53 = vld [vmem:[%s1686_s0 + $0x34] sm:$0xf]  ;;  %v1206_v58 = vor.u32 %v1290_v52, %v1205_v51 }
  0x2c   :  { %1004 = vmatpush.bf16.msra.mxu0 %v1292_v2  ;;  %1313 = vmatpush.bf16.msra.mxu2 %v1292_v2  ;;  %v1175_v54 = vld [vmem:[%s1686_s0 + $0x38] sm:$0xf0]  ;;  %v1289_v55 = vld [vmem:[%s1686_s0 + $0x74] sm:$0xf] }
  0x2d   :  { %v1300_v10 = vld [vmem:[#allocation12 + $0x48] sm:$0xff]  ;;  %v1207_v56 = vld [vmem:[%s1686_s0 + $0x78] sm:$0xf0]  ;;  %v1178_v59 = vor.u32 %v1281_v53, %v1175_v54 }
  0x2e   :  { %1053 = vmatpush.bf16.msra.mxu1 %v1300_v10  ;;  %1321 = vmatpush.bf16.msra.mxu3 %v1300_v10  ;;  %v1210_v60 = vor.u32 %v1289_v55, %v1207_v56 }
  0x2f   :  { %v1291_v16 = vld [vmem:[#allocation12] sm:$0xff] }
  0x30   :  { %1005 = vmatpush.bf16.msra.mxu0 %v1291_v16  ;;  %1314 = vmatpush.bf16.msra.mxu2 %v1291_v16 }
  0x31   :  { %v1299_v21 = vld [vmem:[#allocation12 + $0x40] sm:$0xff] }
  0x32   :  { %1054 = vmatpush.bf16.msra.mxu1 %v1299_v21  ;;  %1322 = vmatpush.bf16.msra.mxu3 %v1299_v21  ;;  %v1620_v61 = vld [vmem:[#allocation13] ss:$0 sm:$0xff] }
  0x33   :  { %1006 = vmatmul.bf16.vlgmr.msra.gmra.mxu0 %v1150_v19  ;;  %1026 = vmatmul.bf16.vlgmr.msra.gmra.mxu2 %v1182_v20 }
  0x35   :  { %1055 = vmatmul.bf16.vlgmr.msra.gmra.mxu1 %v1154_v22  ;;  %1075 = vmatmul.bf16.vlgmr.msra.gmra.mxu3 %v1186_v23 }
  0x43   :  { %1011 = vmatmul.bf16.gmra.mxu0 %v1158_v32  ;;  %1031 = vmatmul.bf16.gmra.mxu2 %v1190_v33 }
  0x45   :  { %1060 = vmatmul.bf16.gmra.mxu1 %v1162_v34  ;;  %1080 = vmatmul.bf16.gmra.mxu3 %v1194_v35 }
  0x53   :  { %1016 = vmatmul.bf16.gmra.mxu0 %v1166_v45  ;;  %1036 = vmatmul.bf16.gmra.mxu2 %v1198_v46 }
  0x55   :  { %1065 = vmatmul.bf16.gmra.mxu1 %v1170_v47  ;;  %1085 = vmatmul.bf16.gmra.mxu3 %v1202_v48 }
  0x63   :  { %1021 = vmatmul.bf16.gmra.mxu0 %v1174_v57  ;;  %1041 = vmatmul.bf16.gmra.mxu2 %v1206_v58 }
  0x65   :  { %1070 = vmatmul.bf16.gmra.mxu1 %v1178_v59  ;;  %1090 = vmatmul.bf16.gmra.mxu3 %v1210_v60 }
  0xb0   :  { %v1007_v62 = vpop.f32.mrf.mxu0 }
  0xb1   :  { %v1008_v63 = vadd.f32 %v1620_v61, %v1007_v62 }
  0xb2   :  { %v1056_v0 = vpop.f32.mrf.mxu1 }
  0xb3   :  { %v1057_v4 = vadd.f32 %v1056_v0, %v1008_v63 }
  0xb5   :  { %1096 = vst [vmem:[%s1691_s5] sm:$0xff] %v1057_v4 }
  0xb6   :  { %v1027_v5 = vpop.f32.mrf.mxu2 }
  0xb7   :  { %v1028_v6 = vadd.f32 %v1620_v61, %v1027_v5 }
  0xb8   :  { %v1076_v7 = vpop.f32.mrf.mxu3  ;;  %v1009_v2 = vpop.f32.mrf.mxu0 }
  0xb9   :  { %v1077_v8 = vadd.f32 %v1076_v7, %v1028_v6  ;;  %v1010_v9 = vadd.f32 %v1620_v61, %v1009_v2 }
  0xba   :  { %v1058_v10 = vpop.f32.mrf.mxu1 }
  0xbb   :  { %1104 = vst [vmem:[%s1691_s5 + $0x40] sm:$0xff] %v1077_v8  ;;  %v1059_v11 = vadd.f32 %v1058_v10, %v1010_v9 }
  0xbd   :  { %1097 = vst [vmem:[%s1691_s5 + $0x8] sm:$0xff] %v1059_v11 }
  0xbe   :  { %v1029_v12 = vpop.f32.mrf.mxu2 }
  0xbf   :  { %v1030_v14 = vadd.f32 %v1620_v61, %v1029_v12 }
  0xc0   :  { %v1078_v15 = vpop.f32.mrf.mxu3  ;;  %v1012_v16 = vpop.f32.mrf.mxu0 }
  0xc1   :  { %v1079_v17 = vadd.f32 %v1078_v15, %v1030_v14  ;;  %v1013_v18 = vadd.f32 %v1620_v61, %v1012_v16 }
  0xc2   :  { %v1061_v19 = vpop.f32.mrf.mxu1 }
  0xc3   :  { %1105 = vst [vmem:[%s1691_s5 + $0x48] sm:$0xff] %v1079_v17  ;;  %v1062_v20 = vadd.f32 %v1061_v19, %v1013_v18 }
  0xc5   :  { %1098 = vst [vmem:[%s1691_s5 + $0x10] sm:$0xff] %v1062_v20 }
  0xc6   :  { %v1032_v21 = vpop.f32.mrf.mxu2 }
  0xc7   :  { %v1033_v22 = vadd.f32 %v1620_v61, %v1032_v21 }
  0xc8   :  { %v1081_v23 = vpop.f32.mrf.mxu3  ;;  %v1014_v24 = vpop.f32.mrf.mxu0 }
  0xc9   :  { %v1082_v25 = vadd.f32 %v1081_v23, %v1033_v22  ;;  %v1015_v26 = vadd.f32 %v1620_v61, %v1014_v24 }
  0xca   :  { %v1063_v27 = vpop.f32.mrf.mxu1 }
  0xcb   :  { %1106 = vst [vmem:[%s1691_s5 + $0x50] sm:$0xff] %v1082_v25  ;;  %v1064_v28 = vadd.f32 %v1063_v27, %v1015_v26 }
  0xcd   :  { %1099 = vst [vmem:[%s1691_s5 + $0x18] sm:$0xff] %v1064_v28 }
  0xce   :  { %v1034_v29 = vpop.f32.mrf.mxu2 }
  0xcf   :  { %v1035_v30 = vadd.f32 %v1620_v61, %v1034_v29 }
  0xd0   :  { %v1083_v31 = vpop.f32.mrf.mxu3  ;;  %v1017_v32 = vpop.f32.mrf.mxu0 }
  0xd1   :  { %v1084_v33 = vadd.f32 %v1083_v31, %v1035_v30  ;;  %v1018_v34 = vadd.f32 %v1620_v61, %v1017_v32 }
  0xd2   :  { %v1066_v35 = vpop.f32.mrf.mxu1 }
  0xd3   :  { %1107 = vst [vmem:[%s1691_s5 + $0x58] sm:$0xff] %v1084_v33  ;;  %v1067_v36 = vadd.f32 %v1066_v35, %v1018_v34 }
  0xd5   :  { %1100 = vst [vmem:[%s1691_s5 + $0x20] sm:$0xff] %v1067_v36 }
  0xd6   :  { %v1037_v37 = vpop.f32.mrf.mxu2 }
  0xd7   :  { %v1038_v38 = vadd.f32 %v1620_v61, %v1037_v37 }
  0xd8   :  { %v1086_v39 = vpop.f32.mrf.mxu3  ;;  %v1019_v40 = vpop.f32.mrf.mxu0 }
  0xd9   :  { %v1087_v3 = vadd.f32 %v1086_v39, %v1038_v38  ;;  %v1020_v41 = vadd.f32 %v1620_v61, %v1019_v40 }
  0xda   :  { %v1068_v42 = vpop.f32.mrf.mxu1 }
  0xdb   :  { %1108 = vst [vmem:[%s1691_s5 + $0x60] sm:$0xff] %v1087_v3  ;;  %v1069_v1 = vadd.f32 %v1068_v42, %v1020_v41 }
  0xdd   :  { %1101 = vst [vmem:[%s1691_s5 + $0x28] sm:$0xff] %v1069_v1 }
  0xde   :  { %v1039_v13 = vpop.f32.mrf.mxu2 }
  0xdf   :  { %v1040_v43 = vadd.f32 %v1620_v61, %v1039_v13 }
  0xe0   :  { %v1088_v44 = vpop.f32.mrf.mxu3  ;;  %v1022_v45 = vpop.f32.mrf.mxu0 }
  0xe1   :  { %v1089_v46 = vadd.f32 %v1088_v44, %v1040_v43  ;;  %v1023_v47 = vadd.f32 %v1620_v61, %v1022_v45 }
  0xe2   :  { %v1071_v48 = vpop.f32.mrf.mxu1 }
  0xe3   :  { %1109 = vst [vmem:[%s1691_s5 + $0x68] sm:$0xff] %v1089_v46  ;;  %v1072_v49 = vadd.f32 %v1071_v48, %v1023_v47 }
  0xe5   :  { %1102 = vst [vmem:[%s1691_s5 + $0x30] sm:$0xff] %v1072_v49 }
  0xe6   :  { %v1042_v50 = vpop.f32.mrf.mxu2 }
  0xe7   :  { %v1043_v51 = vadd.f32 %v1620_v61, %v1042_v50 }
  0xe8   :  { %v1091_v52 = vpop.f32.mrf.mxu3  ;;  %v1024_v53 = vpop.f32.mrf.mxu0 }
  0xe9   :  { %v1092_v54 = vadd.f32 %v1091_v52, %v1043_v51  ;;  %v1025_v55 = vadd.f32 %v1620_v61, %v1024_v53 }
  0xea   :  { %v1073_v56 = vpop.f32.mrf.mxu1 }
  0xeb   :  { %1110 = vst [vmem:[%s1691_s5 + $0x70] sm:$0xff] %v1092_v54  ;;  %v1074_v57 = vadd.f32 %v1073_v56, %v1025_v55 }
  0xed   :  { %1103 = vst [vmem:[%s1691_s5 + $0x38] sm:$0xff] %v1074_v57 }
  0xee   :  { %v1044_v58 = vpop.f32.mrf.mxu2 }
  0xef   :  { %v1045_v59 = vadd.f32 %v1620_v61, %v1044_v58 }
  0xf0   :  { %v1093_v60 = vpop.f32.mrf.mxu3 }
  0xf1   :  { %v1094_v62 = vadd.f32 %v1093_v60, %v1045_v59 }
  0xf3   :  { %1111 = vst [vmem:[%s1691_s5 + $0x78] sm:$0xff] %v1094_v62 }

</bundles_post_ra>
